<compile_context>
chip_gen: v5e
topology: v5e:2x2
jax: 0.10.0
libtpu: 0.0.40
codegen_flags: <defaults>
</compile_context>

<pallas_src>
import functools

import jax
import jax.numpy as jnp
from jax import lax
from jax.experimental import pallas as pl
from jax.experimental.pallas import tpu as pltpu

IN, H1, H2, OUT = 24, 16, 8, 4


def mlp_kernel(x_ref, w1_ref, b1_ref, w2_ref, b2_ref, w3_ref, b3_ref, o_ref):
    x = x_ref[...]                                     # (TB, 24) f32, natural layout

    # fc1 + ReLU.  Contract w1's "in" dim with x's trailing feature dim so the result
    # is feature-major (16, TB): the batch rides the 128-lane axis and no explicit
    # (TB, 24) -> (24, TB) transpose has to be materialized.
    h1 = lax.dot_general(w1_ref[...], x, (((1,), (1,)), ((), ())),
                         preferred_element_type=jnp.float32) + b1_ref[...]
    h1 = jnp.maximum(h1, 0.0)                          # (16, TB)

    # fc2 + Sigmoid (exact; EUP/VPU have ample slack under the HBM-bound path).
    h2 = jnp.dot(w2_ref[...], h1, preferred_element_type=jnp.float32) + b2_ref[...]
    h2 = 1.0 / (1.0 + jnp.exp(-h2))                    # (8, TB)

    # fc3 + Softmax over features (axis=0 here == PyTorch dim=1), numerically stable,
    # exact divide so rows sum to 1 to f32 rounding.
    h3 = jnp.dot(w3_ref[...], h2, preferred_element_type=jnp.float32) + b3_ref[...]
    m = jnp.max(h3, axis=0, keepdims=True)
    e = jnp.exp(h3 - m)
    p = e / jnp.sum(e, axis=0, keepdims=True)          # (4, TB)

    # Only the tiny (4, TB) probability block is transposed back (XLU slot is idle),
    # giving the (TB, 4) batch-major output the module's interface expects.
    o_ref[...] = p.T.astype(o_ref.dtype)


def _batch_tile(B):
    # Small batches: single full-extent block (block == array dim, no (8,128) issue).
    if B <= 1024:
        return B
    # Large batches: big tiles amortize the ~0.35 us per-grid-step overhead, aligned to
    # 512 rows, capped at 16384 (working set ~7 MiB incl. double-buffered x) and sized
    # so the grid stays >= 2 — with the batch axis marked "parallel" v7x shards tiles
    # across its 2 TensorCores.
    tb = min(16384, pl.cdiv(B, 2))
    return ((tb + 511) // 512) * 512


@functools.partial(jax.jit, static_argnames=())
def neural_network_forward(x, params):
    """x: (B, 24) float32 (same interface as the PyTorch module). Returns (B, 4)."""
    B = x.shape[0]
    x = x.astype(jnp.float32)
    TB = _batch_tile(B)
    grid = (pl.cdiv(B, TB),)

    w1, b1 = params["w1"], params["b1"]               # (16,24), (16,1)
    w2, b2 = params["w2"], params["b2"]               # (8,16),  (8,1)
    w3, b3 = params["w3"], params["b3"]               # (4,8),   (4,1)

    # Weights/biases stay resident in VMEM across all batch tiles.
    resident = lambda a: pl.BlockSpec(a.shape, lambda i: (0, 0))

    cost = pl.CostEstimate(
        flops=2 * B * (IN * H1 + H1 * H2 + H2 * OUT),
        transcendentals=B * (H2 + OUT),
        bytes_accessed=4 * (B * IN + B * OUT
                            + IN * H1 + H1 * H2 + H2 * OUT + H1 + H2 + OUT),
    )

    # NOTE: if B % TB != 0, the padded rows of the last x tile are garbage; they stay
    # confined to their own lanes through the lane-wise softmax and are masked on the
    # output writeback, so results are unaffected.
    out = pl.pallas_call(
        mlp_kernel,
        out_shape=jax.ShapeDtypeStruct((B, OUT), jnp.float32),
        grid=grid,
        in_specs=[
            pl.BlockSpec((TB, IN), lambda i: (i, 0)),     # x tile, pipelined over batch
            resident(w1), resident(b1),
            resident(w2), resident(b2),
            resident(w3), resident(b3),
        ],
        out_specs=pl.BlockSpec((TB, OUT), lambda i: (i, 0)),
        compiler_params=pltpu.CompilerParams(
            dimension_semantics=("parallel",),            # shard batch tiles over TCs
            vmem_limit_bytes=32 * 1024 * 1024,            # headroom above v5e's 16 MiB default
        ),
        cost_estimate=cost,
    )(x, w1, b1, w2, b2, w3, b3)

    return out
    # TODO(synk): if upstream can feed bf16 activations, DMA x as bf16 (f32 accumulate
    # in the dots) to halve the dominant HBM traffic on v6e/v7x.


def init_params(key):
    """Deterministic init mimicking nn.Linear: uniform(-1/sqrt(fan_in), 1/sqrt(fan_in)).
    Weights in PyTorch (out, in) layout; biases as (out, 1) columns."""
    def linear(key, fan_in, fan_out):
        kw, kb = jax.random.split(key)
        bound = 1.0 / jnp.sqrt(fan_in)
        w = jax.random.uniform(kw, (fan_out, fan_in), jnp.float32, -bound, bound)
        b = jax.random.uniform(kb, (fan_out, 1), jnp.float32, -bound, bound)
        return w, b

    k1, k2, k3 = jax.random.split(key, 3)
    w1, b1 = linear(k1, IN, H1)
    w2, b2 = linear(k2, H1, H2)
    w3, b3 = linear(k3, H2, OUT)
    return {"w1": w1, "b1": b1, "w2": w2, "b2": b2, "w3": w3, "b3": b3}


def reference_forward(x, params):
    """Pure-JAX reference matching the PyTorch module exactly."""
    h1 = jnp.maximum(x @ params["w1"].T + params["b1"].T, 0.0)
    h2 = jax.nn.sigmoid(h1 @ params["w2"].T + params["b2"].T)
    h3 = h2 @ params["w3"].T + params["b3"].T
    return jax.nn.softmax(h3, axis=1)


if __name__ == "__main__":
    key = jax.random.PRNGKey(0)
    pkey, xkey = jax.random.split(key)
    params = init_params(pkey)
    B = 8
    x = jax.random.normal(xkey, (B, IN), jnp.float32)

    out = neural_network_forward(x, params)
    out = jax.block_until_ready(out)

    assert out.shape == (B, OUT)
    # exact softmax normalization: rows sum to 1 to f32 rounding
    assert jnp.allclose(jnp.sum(out, axis=1), 1.0, atol=1e-4)
    # match the pure-JAX (== PyTorch) forward pass
    ref = reference_forward(x, params)
    assert jnp.allclose(out, ref, atol=2e-3, rtol=2e-3)

    print("KERNEL_OK")
</pallas_src>

<mosaic_0001>
module attributes {stable_mosaic.version = 11 : i64} {
  func.func @mlp_kernel(%arg0: i32, %arg1: memref<8x24xf32, #tpu.memory_space<vmem>>, %arg2: memref<16x24xf32, #tpu.memory_space<vmem>>, %arg3: memref<16x1xf32, #tpu.memory_space<vmem>>, %arg4: memref<8x16xf32, #tpu.memory_space<vmem>>, %arg5: memref<8x1xf32, #tpu.memory_space<vmem>>, %arg6: memref<4x8xf32, #tpu.memory_space<vmem>>, %arg7: memref<4x1xf32, #tpu.memory_space<vmem>>, %arg8: memref<8x4xf32, #tpu.memory_space<vmem>>) attributes {dimension_semantics = [#tpu.dimension_semantics<parallel>], iteration_bounds = array<i64: 1>, scalar_prefetch = 0 : i64, scratch_operands = 0 : i64, tpu.core_type = #tpu.core_type<tc>, window_params = [{transform_indices = @transform_0, window_bounds = array<i64: 8, 24>}, {pipeline_mode = #tpu.pipeline_mode<synchronous>, transform_indices = @transform_1, window_bounds = array<i64: 16, 24>}, {pipeline_mode = #tpu.pipeline_mode<synchronous>, transform_indices = @transform_2, window_bounds = array<i64: 16, 1>}, {pipeline_mode = #tpu.pipeline_mode<synchronous>, transform_indices = @transform_3, window_bounds = array<i64: 8, 16>}, {pipeline_mode = #tpu.pipeline_mode<synchronous>, transform_indices = @transform_4, window_bounds = array<i64: 8, 1>}, {pipeline_mode = #tpu.pipeline_mode<synchronous>, transform_indices = @transform_5, window_bounds = array<i64: 4, 8>}, {pipeline_mode = #tpu.pipeline_mode<synchronous>, transform_indices = @transform_6, window_bounds = array<i64: 4, 1>}, {transform_indices = @transform_7, window_bounds = array<i64: 8, 4>}]} {
    %c0 = arith.constant 0 : index
    %c0_0 = arith.constant 0 : index
    %0 = vector.load %arg1[%c0, %c0_0] : memref<8x24xf32, #tpu.memory_space<vmem>>, vector<8x24xf32>
    %c0_1 = arith.constant 0 : index
    %c0_2 = arith.constant 0 : index
    %1 = vector.load %arg2[%c0_1, %c0_2] : memref<16x24xf32, #tpu.memory_space<vmem>>, vector<16x24xf32>
    %cst = arith.constant dense<0.000000e+00> : vector<16x8xf32>
    %2 = tpu.matmul %1, %0, %cst {dimension_numbers = #tpu.dot_dimension_numbers<[1], [1], [0], [0], [0, 0, 1, 0], [], []>} : vector<16x24xf32>, vector<8x24xf32>, vector<16x8xf32> -> vector<16x8xf32>
    %c0_3 = arith.constant 0 : index
    %c0_4 = arith.constant 0 : index
    %3 = vector.load %arg3[%c0_3, %c0_4] : memref<16x1xf32, #tpu.memory_space<vmem>>, vector<16x1xf32>
    %4 = vector.broadcast %3 : vector<16x1xf32> to vector<16x8xf32>
    %5 = arith.addf %2, %4 : vector<16x8xf32>
    %cst_5 = arith.constant 0.000000e+00 : f32
    %6 = vector.broadcast %cst_5 : f32 to vector<16x8xf32>
    %7 = arith.maximumf %5, %6 : vector<16x8xf32>
    %c0_6 = arith.constant 0 : index
    %c0_7 = arith.constant 0 : index
    %8 = vector.load %arg4[%c0_6, %c0_7] : memref<8x16xf32, #tpu.memory_space<vmem>>, vector<8x16xf32>
    %cst_8 = arith.constant dense<0.000000e+00> : vector<8x8xf32>
    %9 = tpu.matmul %8, %7, %cst_8 {dimension_numbers = #tpu.dot_dimension_numbers<[1], [0], [0], [1], [0, 0, 1, 1], [], []>} : vector<8x16xf32>, vector<16x8xf32>, vector<8x8xf32> -> vector<8x8xf32>
    %c0_9 = arith.constant 0 : index
    %c0_10 = arith.constant 0 : index
    %10 = vector.load %arg5[%c0_9, %c0_10] : memref<8x1xf32, #tpu.memory_space<vmem>>, vector<8x1xf32>
    %11 = vector.broadcast %10 : vector<8x1xf32> to vector<8x8xf32>
    %12 = arith.addf %9, %11 : vector<8x8xf32>
    %cst_11 = arith.constant 0.000000e+00 : f32
    %13 = vector.broadcast %cst_11 : f32 to vector<8x8xf32>
    %14 = arith.subf %13, %12 : vector<8x8xf32>
    %15 = math.exp %14 : vector<8x8xf32>
    %cst_12 = arith.constant 1.000000e+00 : f32
    %16 = vector.broadcast %cst_12 : f32 to vector<8x8xf32>
    %17 = arith.addf %16, %15 : vector<8x8xf32>
    %cst_13 = arith.constant 1.000000e+00 : f32
    %18 = vector.broadcast %cst_13 : f32 to vector<8x8xf32>
    %19 = arith.divf %18, %17 : vector<8x8xf32>
    %c0_14 = arith.constant 0 : index
    %c0_15 = arith.constant 0 : index
    %20 = vector.load %arg6[%c0_14, %c0_15] : memref<4x8xf32, #tpu.memory_space<vmem>>, vector<4x8xf32>
    %cst_16 = arith.constant dense<0.000000e+00> : vector<4x8xf32>
    %21 = tpu.matmul %20, %19, %cst_16 {dimension_numbers = #tpu.dot_dimension_numbers<[1], [0], [0], [1], [0, 0, 1, 1], [], []>} : vector<4x8xf32>, vector<8x8xf32>, vector<4x8xf32> -> vector<4x8xf32>
    %c0_17 = arith.constant 0 : index
    %c0_18 = arith.constant 0 : index
    %22 = vector.load %arg7[%c0_17, %c0_18] : memref<4x1xf32, #tpu.memory_space<vmem>>, vector<4x1xf32>
    %23 = vector.broadcast %22 : vector<4x1xf32> to vector<4x8xf32>
    %24 = arith.addf %21, %23 : vector<4x8xf32>
    %cst_19 = arith.constant dense<0xFF800000> : vector<8xf32>
    %25 = vector.multi_reduction <maximumf>, %24, %cst_19 [0] : vector<4x8xf32> to vector<8xf32>
    %26 = vector.shape_cast %25 : vector<8xf32> to vector<1x8xf32>
    %27 = vector.broadcast %26 : vector<1x8xf32> to vector<4x8xf32>
    %28 = arith.subf %24, %27 : vector<4x8xf32>
    %29 = math.exp %28 : vector<4x8xf32>
    %cst_20 = arith.constant dense<0.000000e+00> : vector<8xf32>
    %30 = vector.multi_reduction <add>, %29, %cst_20 [0] : vector<4x8xf32> to vector<8xf32>
    %31 = vector.shape_cast %30 : vector<8xf32> to vector<1x8xf32>
    %32 = vector.broadcast %31 : vector<1x8xf32> to vector<4x8xf32>
    %33 = arith.divf %29, %32 : vector<4x8xf32>
    %34 = tpu.transpose %33, [1, 0] : vector<4x8xf32> -> vector<8x4xf32>
    %c0_21 = arith.constant 0 : index
    %c0_22 = arith.constant 0 : index
    %35 = vector.load %arg8[%c0_21, %c0_22] : memref<8x4xf32, #tpu.memory_space<vmem>>, vector<8x4xf32>
    tpu.vector_store %arg8[%c0_21, %c0_22], %34 {strides = array<i32>} : memref<8x4xf32, #tpu.memory_space<vmem>>, vector<8x4xf32>,
    return
  }
  func.func @transform_0(%arg0: i32) -> (i32, i32) {
    %c0_i32 = arith.constant 0 : i32
    %c0_i32_0 = arith.constant 0 : i32
    return %arg0, %c0_i32 : i32, i32
  }
  func.func @transform_1(%arg0: i32) -> (i32, i32) {
    %c0_i32 = arith.constant 0 : i32
    %c0_i32_0 = arith.constant 0 : i32
    %c0_i32_1 = arith.constant 0 : i32
    return %c0_i32, %c0_i32_0 : i32, i32
  }
  func.func @transform_2(%arg0: i32) -> (i32, i32) {
    %c0_i32 = arith.constant 0 : i32
    %c0_i32_0 = arith.constant 0 : i32
    %c0_i32_1 = arith.constant 0 : i32
    return %c0_i32, %c0_i32_0 : i32, i32
  }
  func.func @transform_3(%arg0: i32) -> (i32, i32) {
    %c0_i32 = arith.constant 0 : i32
    %c0_i32_0 = arith.constant 0 : i32
    %c0_i32_1 = arith.constant 0 : i32
    return %c0_i32, %c0_i32_0 : i32, i32
  }
  func.func @transform_4(%arg0: i32) -> (i32, i32) {
    %c0_i32 = arith.constant 0 : i32
    %c0_i32_0 = arith.constant 0 : i32
    %c0_i32_1 = arith.constant 0 : i32
    return %c0_i32, %c0_i32_0 : i32, i32
  }
  func.func @transform_5(%arg0: i32) -> (i32, i32) {
    %c0_i32 = arith.constant 0 : i32
    %c0_i32_0 = arith.constant 0 : i32
    %c0_i32_1 = arith.constant 0 : i32
    return %c0_i32, %c0_i32_0 : i32, i32
  }
  func.func @transform_6(%arg0: i32) -> (i32, i32) {
    %c0_i32 = arith.constant 0 : i32
    %c0_i32_0 = arith.constant 0 : i32
    %c0_i32_1 = arith.constant 0 : i32
    return %c0_i32, %c0_i32_0 : i32, i32
  }
  func.func @transform_7(%arg0: i32) -> (i32, i32) {
    %c0_i32 = arith.constant 0 : i32
    %c0_i32_0 = arith.constant 0 : i32
    return %arg0, %c0_i32 : i32, i32
  }
}

</mosaic_0001>

<bundles_post_ra>
// kernel: neural_network_forward.1
= control target key start
LH: loop header
LB: loop body
LE: loop exit
PB: predicated region body
PF: predicated region fallthrough
CT: control target
= control target key end

     0   :  { %vm41_vm0 = vcmask 195584   ;;  %v246_v1 = vmov 0   ;;  %vm83_vm1 = vcmask 130048   ;;  %vm133_vm6 = vcmask 64512   ;;  %s317_s0 = inlined_call_operand.vmem [shape: f32[8,24], index: 0, kind: input, shape index: {}]   ;;  %s318_s1 = inlined_call_operand.vmem [shape: f32[16,24], index: 1, kind: input, shape index: {}]   ;;  %s319_s2 = inlined_call_operand.vmem [shape: f32[16,1], index: 2, kind: input, shape index: {}]   ;;  %s320_s4 = inlined_call_operand.vmem [shape: f32[8,1], index: 4, kind: input, shape index: {}]   ;;  %s321_s6 = inlined_call_operand.vmem [shape: f32[4,1], index: 6, kind: input, shape index: {}]   ;;  %s322_s3 = inlined_call_operand.vmem [shape: f32[8,16], index: 3, kind: input, shape index: {}]   ;;  %s323_s5 = inlined_call_operand.vmem [shape: f32[4,8], index: 5, kind: input, shape index: {}]   ;;  %s324_s7 = inlined_call_operand.vmem [shape: f32[8,4], index: 7, kind: output, shape index: {}]  }
   0x1   :  { %v26_v0 = vld [vmem:[%s317_s0] sm:$0xff]  ;;  %236 = vset.pattern.permute.xlu0 %v246_v1  ;;  %237 = vset.pattern.permute.xlu1 %v246_v1  ;;  %v28_v3 = vld [vmem:[%s318_s1 + $0x8] sm:$0xff]  ;;  %vm157_vm7 = vcmask 60416   ;;  %vm222_vm12 = vcmask 31744  }
   0x2   :  { %228 = vmatpush.xpose.msk.msra.mxu0 %vm41_vm0, %v26_v0  ;;  %233 = vmatpush.xpose.msk.msra.mxu3 %vm41_vm0, %v26_v0  ;;  %v27_v2 = vld [vmem:[%s318_s1] sm:$0xff]  ;;  %v30_v4 = vld [vmem:[%s319_s2 + $0x8] sm:$0xff] }
   0x3   :  { %38 = vperm.xlu0 %236, %v30_v4   ;;  %v29_v5 = vld [vmem:[%s319_s2] sm:$0xff] }
   0x4   :  { %v77_v6 = vld [vmem:[%s320_s4] sm:$0xff] }
   0x5   :  { %229 = vmatmul.msk.f32.vlgmr.msra.gmra.mxu0 %vm41_vm0, %v27_v2  ;;  %230 = vmatmul.msk.f32.vlgmr.msra.gmra.mxu3 %vm41_vm0, %v28_v3  ;;  %v127_v7 = vld [vmem:[%s321_s6] sm:$0xf] }
   0x6   :  { %80 = vperm.xlu1 %237, %v77_v6   ;;  %v76_v16 = vld [vmem:[%s322_s3] sm:$0xff] }
   0x7   :  { %v126_v33 = vld [vmem:[%s323_s5] sm:$0xf] }
   0xb   :  { %33 = vperm.xlu0 %236, %v29_v5  }
   0xe   :  { %130 = vperm.xlu1 %237, %v127_v7  }
  0x75   :  { %v39_v8 = vpop.permute.xlu0 %38 }
  0x78   :  { %v81_v17 = vpop.permute.xlu1 %80 }
  0x7d   :  { %v34_v9 = vpop.permute.xlu0 %33 }
  0x80   :  { %v131_v35 = vpop.permute.xlu1 %130 }
  0x82   :  { %v68_v10 = vpop.f32.mrf.mxu0 }
  0x83   :  { %v69_v12 = vadd.f32 %v68_v10, %v34_v9 }
  0x85   :  { %v74_v15 = vmax.f32 %v69_v12, 0.0 }
  0x88   :  { %v71_v11 = vpop.f32.mrf.mxu3 }
  0x89   :  { %v72_v13 = vadd.f32 %v71_v11, %v39_v8 }
  0x8b   :  { %v75_v14 = vmax.f32 %v72_v13, 0.0 }
  0x8d   :  { %101 = vmatpush.msra.mxu1 %v75_v14 }
  0x8f   :  { %102 = vmatpush.msra.mxu1 %v74_v15 }
  0x90   :  { %231 = vmatmul.msk.f32.vlgmr.msra.gmra.mxu1 %vm83_vm1, %v76_v16 }
 0x10d   :  { %v104_v18 = vpop.f32.mrf.mxu1 }
 0x10e   :  { %v105_v19 = vadd.f32 %v104_v18, %v81_v17 }
 0x110   :  { %v107_v20 = vsub.f32 0.0, %v105_v19 }
 0x112   :  { %v108_v21 = vmul.f32 1.442695, %v107_v20 }
 0x114   :  { %238 = vpow2.f32 %v108_v21 }
 0x11a   :  { %v239_v22 = vpop.eup %238 }
 0x11b   :  { %v110_v23 = vadd.f32 1.0, %v239_v22 }
 0x11d   :  { %240 = vrcp.f32 %v110_v23  ;;  %v122_v27 = vand.u32 2147483648, %v110_v23  ;;  %v120_v29 = vand.u32 2147483647, %v110_v23  ;;  %vm116_vm3 = vweird.f32 %v110_v23 }
 0x11f   :  { %v123_v31 = vor.u32 1.1754944e-38, %v122_v27  ;;  %vm121_vm5 = vcmp.eq.f32.partialorder %v120_v29, 8.507059e+37 }
 0x123   :  { %v241_v24 = vpop.eup %240 }
 0x124   :  { %v112_v25 = vmul.f32 %v241_v24, %v110_v23  ;;  %vm117_vm2 = vweird.f32 %v241_v24 }
 0x125   :  { %vm118_vm4 = vmor %vm116_vm3, %vm117_vm2 }
 0x126   :  { %v113_v26 = vsub.f32 1.0, %v112_v25 }
 0x128   :  { %v114_v28 = vmul.f32 %v241_v24, %v113_v26 }
 0x12a   :  { %v115_v30 = vadd.f32 %v241_v24, %v114_v28 }
 0x12c   :  { %v119_v32 = vsel %vm118_vm4, %v241_v24, %v115_v30 }
 0x12d   :  { %v124_v34 = vsel %vm121_vm5, %v123_v31, %v119_v32 }
 0x12e   :  { %152 = vmatpush.msra.mxu2 %v124_v34 }
 0x12f   :  { %232 = vmatmul.msk.f32.vlgmr.msra.gmra.mxu2 %vm133_vm6, %v126_v33 }
 0x1b2   :  { %v154_v36 = vpop.f32.mrf.mxu2 }
 0x1b3   :  { %v155_v37 = vadd.f32 %v154_v36, %v131_v35 }
 0x1b5   :  { %v158_v38 = vsel %vm157_vm7, %v155_v37, -inf }
 0x1b6   :  { %v159_v39 = vrot.slane %v158_v38, 4 }
 0x1b8   :  { %v160_v40 = vmax.f32 %v158_v38, %v159_v39 }
 0x1ba   :  { %v161_v41 = vrot.slane %v160_v40, 2 }
 0x1bc   :  { %v162_v42 = vmax.f32 %v160_v40, %v161_v41 }
 0x1be   :  { %v163_v43 = vrot.slane %v162_v42, 1 }
 0x1c0   :  { %v164_v44 = vmax.f32 %v162_v42, %v163_v43 }
 0x1c2   :  { %v165_v45 = vsub.f32 %v155_v37, %v164_v44 }
 0x1c4   :  { %v166_v46 = vmul.f32 1.442695, %v165_v45 }
 0x1c6   :  { %242 = vpow2.f32 %v166_v46 }
 0x1cc   :  { %v243_v47 = vpop.eup %242 }
 0x1cd   :  { %v168_v48 = vsel %vm157_vm7, %v243_v47, 0.0 }
 0x1ce   :  { %v169_v49 = vrot.slane %v168_v48, 4 }
 0x1d0   :  { %v170_v50 = vadd.f32 %v169_v49, %v168_v48 }
 0x1d2   :  { %v171_v51 = vrot.slane %v170_v50, 2 }
 0x1d4   :  { %v172_v52 = vadd.f32 %v171_v51, %v170_v50 }
 0x1d6   :  { %v173_v53 = vrot.slane %v172_v52, 1 }
 0x1d8   :  { %v174_v54 = vadd.f32 %v173_v53, %v172_v52 }
 0x1da   :  { %244 = vrcp.f32 %v174_v54  ;;  %v186_v58 = vand.u32 2147483648, %v174_v54  ;;  %v184_v60 = vand.u32 2147483647, %v174_v54  ;;  %vm180_vm9 = vweird.f32 %v174_v54 }
 0x1dc   :  { %v187_v62 = vor.u32 1.1754944e-38, %v186_v58  ;;  %vm185_vm11 = vcmp.eq.f32.partialorder %v184_v60, 8.507059e+37 }
 0x1e0   :  { %v245_v55 = vpop.eup %244 }
 0x1e1   :  { %v176_v56 = vmul.f32 %v245_v55, %v174_v54  ;;  %vm181_vm8 = vweird.f32 %v245_v55 }
 0x1e2   :  { %vm182_vm10 = vmor %vm180_vm9, %vm181_vm8 }
 0x1e3   :  { %v177_v57 = vsub.f32 1.0, %v176_v56 }
 0x1e5   :  { %v178_v59 = vmul.f32 %v245_v55, %v177_v57 }
 0x1e7   :  { %v179_v61 = vadd.f32 %v245_v55, %v178_v59 }
 0x1e9   :  { %v183_v63 = vsel %vm182_vm10, %v245_v55, %v179_v61 }
 0x1ea   :  { %v188_v0 = vsel %vm185_vm11, %v187_v62, %v183_v63 }
 0x1eb   :  { %v189_v1 = vmul.f32 %v243_v47, %v188_v0 }
 0x1ed   :  { %190 = vxpose.xlu2.b32.start.end [1/1] (short) (narrow) %v189_v1, 8 }
 0x286   :  { %v206_v2 = vpop.trf.xlu2 }
 0x287   :  { %223 = vst.msk [vmem:[%s324_s7] sm:$0xff] %vm222_vm12, %v206_v2 }

</bundles_post_ra>
